<compile_context>
chip_gen: v6e
topology: v6e:2x2x1
jax: 0.10.0
libtpu: 0.0.40
codegen_flags: <defaults>
</compile_context>

<pallas_src>
import functools
import math
from dataclasses import dataclass

import jax
import jax.numpy as jnp
from jax import lax
from jax.experimental import pallas as pl
from jax.experimental.pallas import tpu as pltpu


@dataclass
class GPTConfig:
    block_size: int = 1024
    vocab_size: int = 50257
    n_layer: int = 12
    n_head: int = 12
    n_embd: int = 768
    norm_eps: float = 1e-05


# --------------------------------- kernel -------------------------------------

def causal_attention_kernel(x_ref, wq_ref, wk_ref, wv_ref, bq_ref, bk_ref, bv_ref,
                            wp_ref, bp_ref, o_ref, *, n_batch, n_head):
    """x_ref: (B*T, C) f32.  Weights already split / pre-scaled / cast by the wrapper."""
    mxu = wq_ref.dtype                       # MXU operand dtype (bf16 or f32)
    x = x_ref[...]                           # (B*T, C) f32
    bt, c = x.shape
    t = bt // n_batch
    hs = c // n_head

    # --- QKV projections: one matmul each over all B*T rows (f32 accumulation) ---
    xm = x.astype(mxu)
    q = jnp.dot(xm, wq_ref[...], preferred_element_type=jnp.float32) + bq_ref[...]
    k = jnp.dot(xm, wk_ref[...], preferred_element_type=jnp.float32) + bk_ref[...]
    v = jnp.dot(xm, wv_ref[...], preferred_element_type=jnp.float32) + bv_ref[...]

    # (B*T, C) -> (B, T, C): leading-dim split, no lane relayout.
    q3 = q.reshape(n_batch, t, c)
    k3 = k.reshape(n_batch, t, c)
    v3 = v.reshape(n_batch, t, c)

    # Assemble a single (head, batch) axis G = n_head*B without 4-D transposes:
    # lane-slice each head and stack along the leading (untiled) axis.
    def split_heads(a):                      # (B, T, C) -> (G, T, hs), g = h*B + b
        return jnp.concatenate(
            [a[:, :, h * hs:(h + 1) * hs] for h in range(n_head)], axis=0)

    qh = split_heads(q3).astype(mxu)         # (G, T, hs)  (scale already folded in)
    kh = split_heads(k3).astype(mxu)
    vh = split_heads(v3)

    # --- one batched contraction over all (head, batch) pairs ---
    att = jnp.einsum('gqd,gkd->gqk', qh, kh,
                     preferred_element_type=jnp.float32)          # (G, T, T) f32

    rows = lax.broadcasted_iota(jnp.int32, (t, t), 0)
    cols = lax.broadcasted_iota(jnp.int32, (t, t), 1)
    causal = (rows >= cols)[None, :, :]                            # (1, T, T)
    att = jnp.where(causal, att, -1e30)      # finite neg: no inf-inf NaN possible

    att = att - jnp.max(att, axis=-1, keepdims=True)
    p = jnp.exp(att)
    p = p * pl.reciprocal(jnp.sum(p, axis=-1, keepdims=True), approx=True)

    y = jnp.einsum('gqk,gkd->gqd', p.astype(mxu), vh.astype(mxu),
                   preferred_element_type=jnp.float32)             # (G, T, hs)

    # (G, T, hs) -> (B, T, C) -> (B*T, C): leading-axis slices + lane concat + merge.
    y3 = jnp.concatenate(
        [y[h * n_batch:(h + 1) * n_batch] for h in range(n_head)], axis=-1)
    y2 = y3.reshape(bt, c)

    out = jnp.dot(y2.astype(mxu), wp_ref[...],
                  preferred_element_type=jnp.float32) + bp_ref[...]
    o_ref[...] = out.astype(o_ref.dtype)


# --------------------------------- wrapper ------------------------------------

def causal_self_attention(x, params, *, n_head, mxu_dtype=jnp.bfloat16):
    """x: (B, T, C) float32. Returns (B, T, C) float32."""
    B, T, C = x.shape
    assert C % n_head == 0
    hs = C // n_head
    scale = 1.0 / math.sqrt(hs)

    w_attn = params["c_attn_w"]                     # (C, 3C) == torch c_attn.weight.T
    b_attn = params["c_attn_b"]                     # (3C,)

    # One-time (wrapper-side) preprocessing: split fused QKV, fold attention scale
    # into the Q projection, cast MXU operands, keep biases in f32.
    wq = (w_attn[:, 0 * C:1 * C] * scale).astype(mxu_dtype)
    wk = w_attn[:, 1 * C:2 * C].astype(mxu_dtype)
    wv = w_attn[:, 2 * C:3 * C].astype(mxu_dtype)
    bq = (b_attn[0 * C:1 * C] * scale).reshape(1, C).astype(jnp.float32)
    bk = b_attn[1 * C:2 * C].reshape(1, C).astype(jnp.float32)
    bv = b_attn[2 * C:3 * C].reshape(1, C).astype(jnp.float32)
    wp = params["c_proj_w"].astype(mxu_dtype)       # (C, C) == torch c_proj.weight.T
    bp = params["c_proj_b"].reshape(1, C).astype(jnp.float32)

    # Fold batch into MXU rows (free reshape of a contiguous HBM array).
    x2 = x.reshape(B * T, C).astype(jnp.float32)

    def full(a):
        return pl.BlockSpec(a.shape, lambda i, nd=a.ndim: (0,) * nd)

    kernel = functools.partial(causal_attention_kernel, n_batch=B, n_head=n_head)
    out = pl.pallas_call(
        kernel,
        out_shape=jax.ShapeDtypeStruct((B * T, C), jnp.float32),
        grid=(1,),
        in_specs=[full(x2), full(wq), full(wk), full(wv),
                  full(bq), full(bk), full(bv), full(wp), full(bp)],
        out_specs=pl.BlockSpec((B * T, C), lambda i: (0, 0)),
        compiler_params=pltpu.CompilerParams(dimension_semantics=("arbitrary",)),
    )(x2, wq, wk, wv, bq, bk, bv, wp, bp)
    return out.reshape(B, T, C)


# ------------------------- pure-JAX reference (for checks) --------------------

def reference_attention(x, params, n_head):
    B, T, C = x.shape
    hs = C // n_head
    qkv = x @ params["c_attn_w"] + params["c_attn_b"]
    q, k, v = jnp.split(qkv, 3, axis=-1)

    def to_heads(a):
        return a.reshape(B, T, n_head, hs).transpose(0, 2, 1, 3)

    q, k, v = to_heads(q), to_heads(k), to_heads(v)
    att = (q @ jnp.swapaxes(k, -1, -2)) * (1.0 / math.sqrt(hs))
    mask = jnp.tril(jnp.ones((T, T), dtype=bool))
    att = jnp.where(mask, att, -jnp.inf)
    p = jax.nn.softmax(att, axis=-1)
    y = (p @ v).transpose(0, 2, 1, 3).reshape(B, T, C)
    return y @ params["c_proj_w"] + params["c_proj_b"]


# --------------------------------- params -------------------------------------

def init_params(key, cfg: GPTConfig):
    C = cfg.n_embd
    k1, k2, k3, k4 = jax.random.split(key, 4)

    def w(k, shape):
        return (0.02 * jax.random.normal(k, shape)).astype(jnp.float32)

    return {
        "c_attn_w": w(k1, (C, 3 * C)),   # stored as (in, out) == torch weight.T
        "c_attn_b": w(k2, (3 * C,)),
        "c_proj_w": w(k3, (C, C)),
        "c_proj_b": w(k4, (C,)),
    }


# ----------------------------------- main --------------------------------------

if __name__ == "__main__":
    cfg = GPTConfig(block_size=16, vocab_size=256, n_layer=2, n_head=2,
                    n_embd=32, norm_eps=1e-5)
    root = jax.random.PRNGKey(0)
    k_params, k_x = jax.random.split(root)
    params = init_params(k_params, cfg)

    B, T = 2, 8
    x = jax.random.normal(k_x, (B, T, cfg.n_embd), dtype=jnp.float32)

    attn = jax.jit(causal_self_attention, static_argnames=("n_head", "mxu_dtype"))

    # f32-MXU path: verify numerics against the pure-JAX reference.
    y_f32 = jax.block_until_ready(
        attn(x, params, n_head=cfg.n_head, mxu_dtype=jnp.float32))
    y_ref = reference_attention(x, params, cfg.n_head)
    assert y_f32.shape == (B, T, cfg.n_embd), y_f32.shape
    assert bool(jnp.all(jnp.isfinite(y_f32)))
    assert bool(jnp.allclose(y_f32, y_ref, atol=1e-3, rtol=1e-3)), \
        float(jnp.max(jnp.abs(y_f32 - y_ref)))

    # Default bf16-MXU path (v6e/v7x fast path; f32 accumulation + f32 softmax).
    y_bf16 = jax.block_until_ready(attn(x, params, n_head=cfg.n_head))
    assert y_bf16.shape == (B, T, cfg.n_embd)
    assert bool(jnp.all(jnp.isfinite(y_bf16)))
    assert bool(jnp.allclose(y_bf16, y_ref, atol=2e-2, rtol=2e-1))

    print("KERNEL_OK")
</pallas_src>

<mosaic_0001>
module attributes {stable_mosaic.version = 11 : i64} {
  func.func @causal_attention_kernel(%arg0: i32, %arg1: memref<16x32xf32, #tpu.memory_space<vmem>>, %arg2: memref<32x32xf32, #tpu.memory_space<vmem>>, %arg3: memref<32x32xf32, #tpu.memory_space<vmem>>, %arg4: memref<32x32xf32, #tpu.memory_space<vmem>>, %arg5: memref<1x32xf32, #tpu.memory_space<vmem>>, %arg6: memref<1x32xf32, #tpu.memory_space<vmem>>, %arg7: memref<1x32xf32, #tpu.memory_space<vmem>>, %arg8: memref<32x32xf32, #tpu.memory_space<vmem>>, %arg9: memref<1x32xf32, #tpu.memory_space<vmem>>, %arg10: memref<16x32xf32, #tpu.memory_space<vmem>>) attributes {dimension_semantics = [#tpu.dimension_semantics<arbitrary>], iteration_bounds = array<i64: 1>, scalar_prefetch = 0 : i64, scratch_operands = 0 : i64, tpu.core_type = #tpu.core_type<tc>, window_params = [{pipeline_mode = #tpu.pipeline_mode<synchronous>, transform_indices = @transform_0, window_bounds = array<i64: 16, 32>}, {pipeline_mode = #tpu.pipeline_mode<synchronous>, transform_indices = @transform_1, window_bounds = array<i64: 32, 32>}, {pipeline_mode = #tpu.pipeline_mode<synchronous>, transform_indices = @transform_2, window_bounds = array<i64: 32, 32>}, {pipeline_mode = #tpu.pipeline_mode<synchronous>, transform_indices = @transform_3, window_bounds = array<i64: 32, 32>}, {pipeline_mode = #tpu.pipeline_mode<synchronous>, transform_indices = @transform_4, window_bounds = array<i64: 1, 32>}, {pipeline_mode = #tpu.pipeline_mode<synchronous>, transform_indices = @transform_5, window_bounds = array<i64: 1, 32>}, {pipeline_mode = #tpu.pipeline_mode<synchronous>, transform_indices = @transform_6, window_bounds = array<i64: 1, 32>}, {pipeline_mode = #tpu.pipeline_mode<synchronous>, transform_indices = @transform_7, window_bounds = array<i64: 32, 32>}, {pipeline_mode = #tpu.pipeline_mode<synchronous>, transform_indices = @transform_8, window_bounds = array<i64: 1, 32>}, {pipeline_mode = #tpu.pipeline_mode<synchronous>, transform_indices = @transform_9, window_bounds = array<i64: 16, 32>}]} {
    %c0 = arith.constant 0 : index
    %c0_0 = arith.constant 0 : index
    %0 = vector.load %arg1[%c0, %c0_0] : memref<16x32xf32, #tpu.memory_space<vmem>>, vector<16x32xf32>
    %c0_1 = arith.constant 0 : index
    %c0_2 = arith.constant 0 : index
    %1 = vector.load %arg2[%c0_1, %c0_2] : memref<32x32xf32, #tpu.memory_space<vmem>>, vector<32x32xf32>
    %cst = arith.constant dense<0.000000e+00> : vector<16x32xf32>
    %2 = tpu.matmul %0, %1, %cst {dimension_numbers = #tpu.dot_dimension_numbers<[1], [0], [0], [1], [0, 0, 1, 1], [], []>} : vector<16x32xf32>, vector<32x32xf32>, vector<16x32xf32> -> vector<16x32xf32>
    %c0_3 = arith.constant 0 : index
    %c0_4 = arith.constant 0 : index
    %3 = vector.load %arg5[%c0_3, %c0_4] : memref<1x32xf32, #tpu.memory_space<vmem>>, vector<1x32xf32>
    %4 = vector.broadcast %3 : vector<1x32xf32> to vector<16x32xf32>
    %5 = arith.addf %2, %4 : vector<16x32xf32>
    %c0_5 = arith.constant 0 : index
    %c0_6 = arith.constant 0 : index
    %6 = vector.load %arg3[%c0_5, %c0_6] : memref<32x32xf32, #tpu.memory_space<vmem>>, vector<32x32xf32>
    %cst_7 = arith.constant dense<0.000000e+00> : vector<16x32xf32>
    %7 = tpu.matmul %0, %6, %cst_7 {dimension_numbers = #tpu.dot_dimension_numbers<[1], [0], [0], [1], [0, 0, 1, 1], [], []>} : vector<16x32xf32>, vector<32x32xf32>, vector<16x32xf32> -> vector<16x32xf32>
    %c0_8 = arith.constant 0 : index
    %c0_9 = arith.constant 0 : index
    %8 = vector.load %arg6[%c0_8, %c0_9] : memref<1x32xf32, #tpu.memory_space<vmem>>, vector<1x32xf32>
    %9 = vector.broadcast %8 : vector<1x32xf32> to vector<16x32xf32>
    %10 = arith.addf %7, %9 : vector<16x32xf32>
    %c0_10 = arith.constant 0 : index
    %c0_11 = arith.constant 0 : index
    %11 = vector.load %arg4[%c0_10, %c0_11] : memref<32x32xf32, #tpu.memory_space<vmem>>, vector<32x32xf32>
    %cst_12 = arith.constant dense<0.000000e+00> : vector<16x32xf32>
    %12 = tpu.matmul %0, %11, %cst_12 {dimension_numbers = #tpu.dot_dimension_numbers<[1], [0], [0], [1], [0, 0, 1, 1], [], []>} : vector<16x32xf32>, vector<32x32xf32>, vector<16x32xf32> -> vector<16x32xf32>
    %c0_13 = arith.constant 0 : index
    %c0_14 = arith.constant 0 : index
    %13 = vector.load %arg7[%c0_13, %c0_14] : memref<1x32xf32, #tpu.memory_space<vmem>>, vector<1x32xf32>
    %14 = vector.broadcast %13 : vector<1x32xf32> to vector<16x32xf32>
    %15 = arith.addf %12, %14 : vector<16x32xf32>
    %16 = vector.shape_cast %5 : vector<16x32xf32> to vector<2x8x32xf32>
    %17 = vector.shape_cast %10 : vector<16x32xf32> to vector<2x8x32xf32>
    %18 = vector.shape_cast %15 : vector<16x32xf32> to vector<2x8x32xf32>
    %19 = vector.extract_strided_slice %16 {offsets = [0, 0, 0], sizes = [2, 8, 16], strides = [1, 1, 1]} : vector<2x8x32xf32> to vector<2x8x16xf32>
    %20 = vector.extract_strided_slice %16 {offsets = [0, 0, 16], sizes = [2, 8, 16], strides = [1, 1, 1]} : vector<2x8x32xf32> to vector<2x8x16xf32>
    %21 = tpu.concatenate %19, %20 in 0 : vector<2x8x16xf32>, vector<2x8x16xf32> -> vector<4x8x16xf32>
    %22 = vector.extract_strided_slice %17 {offsets = [0, 0, 0], sizes = [2, 8, 16], strides = [1, 1, 1]} : vector<2x8x32xf32> to vector<2x8x16xf32>
    %23 = vector.extract_strided_slice %17 {offsets = [0, 0, 16], sizes = [2, 8, 16], strides = [1, 1, 1]} : vector<2x8x32xf32> to vector<2x8x16xf32>
    %24 = tpu.concatenate %22, %23 in 0 : vector<2x8x16xf32>, vector<2x8x16xf32> -> vector<4x8x16xf32>
    %25 = vector.extract_strided_slice %18 {offsets = [0, 0, 0], sizes = [2, 8, 16], strides = [1, 1, 1]} : vector<2x8x32xf32> to vector<2x8x16xf32>
    %26 = vector.extract_strided_slice %18 {offsets = [0, 0, 16], sizes = [2, 8, 16], strides = [1, 1, 1]} : vector<2x8x32xf32> to vector<2x8x16xf32>
    %27 = tpu.concatenate %25, %26 in 0 : vector<2x8x16xf32>, vector<2x8x16xf32> -> vector<4x8x16xf32>
    "tpu.trace_start"() <{level = 10 : i32, message = "gqd,gkd->gqk"}> : () -> ()
    %cst_15 = arith.constant dense<0.000000e+00> : vector<4x8x8xf32>
    %28 = tpu.matmul %21, %24, %cst_15 {dimension_numbers = #tpu.dot_dimension_numbers<[2], [2], [1], [1], [0, 0, 0, 1, 1, 1], [0], [0]>} : vector<4x8x16xf32>, vector<4x8x16xf32>, vector<4x8x8xf32> -> vector<4x8x8xf32>
    "tpu.trace_stop"() : () -> ()
    %29 = tpu.iota {dimensions = array<i32: 0>} : vector<8x8xi32>
    %30 = tpu.iota {dimensions = array<i32: 1>} : vector<8x8xi32>
    %31 = arith.cmpi sge, %29, %30 : vector<8x8xi32>
    %32 = vector.shape_cast %31 : vector<8x8xi1> to vector<1x8x8xi1>
    %cst_16 = arith.constant -1.000000e+30 : f32
    %33 = vector.shape_cast %32 : vector<1x8x8xi1> to vector<1x8x8xi1>
    %34 = vector.broadcast %33 : vector<1x8x8xi1> to vector<4x8x8xi1>
    %35 = vector.broadcast %cst_16 : f32 to vector<4x8x8xf32>
    %36 = arith.select %34, %28, %35 : vector<4x8x8xi1>, vector<4x8x8xf32>
    %cst_17 = arith.constant dense<0xFF800000> : vector<4x8xf32>
    %37 = vector.multi_reduction <maximumf>, %36, %cst_17 [2] : vector<4x8x8xf32> to vector<4x8xf32>
    %38 = vector.shape_cast %37 : vector<4x8xf32> to vector<4x8x1xf32>
    %39 = vector.broadcast %38 : vector<4x8x1xf32> to vector<4x8x8xf32>
    %40 = arith.subf %36, %39 : vector<4x8x8xf32>
    %41 = math.exp %40 : vector<4x8x8xf32>
    %cst_18 = arith.constant dense<0.000000e+00> : vector<4x8xf32>
    %42 = vector.multi_reduction <add>, %41, %cst_18 [2] : vector<4x8x8xf32> to vector<4x8xf32>
    %43 = vector.shape_cast %42 : vector<4x8xf32> to vector<4x8x1xf32>
    %44 = tpu.reciprocal %43 {approx = true} : vector<4x8x1xf32> -> vector<4x8x1xf32>
    %45 = vector.broadcast %44 : vector<4x8x1xf32> to vector<4x8x8xf32>
    %46 = arith.mulf %41, %45 : vector<4x8x8xf32>
    "tpu.trace_start"() <{level = 10 : i32, message = "gqk,gkd->gqd"}> : () -> ()
    %cst_19 = arith.constant dense<0.000000e+00> : vector<4x8x16xf32>
    %47 = tpu.matmul %46, %27, %cst_19 {dimension_numbers = #tpu.dot_dimension_numbers<[2], [1], [1], [2], [0, 0, 0, 1, 1, 2], [0], [0]>} : vector<4x8x8xf32>, vector<4x8x16xf32>, vector<4x8x16xf32> -> vector<4x8x16xf32>
    "tpu.trace_stop"() : () -> ()
    %48 = vector.extract_strided_slice %47 {offsets = [0, 0, 0], sizes = [2, 8, 16], strides = [1, 1, 1]} : vector<4x8x16xf32> to vector<2x8x16xf32>
    %49 = vector.extract_strided_slice %47 {offsets = [2, 0, 0], sizes = [2, 8, 16], strides = [1, 1, 1]} : vector<4x8x16xf32> to vector<2x8x16xf32>
    %50 = tpu.concatenate %48, %49 in 2 : vector<2x8x16xf32>, vector<2x8x16xf32> -> vector<2x8x32xf32>
    %51 = vector.shape_cast %50 : vector<2x8x32xf32> to vector<16x32xf32>
    %c0_20 = arith.constant 0 : index
    %c0_21 = arith.constant 0 : index
    %52 = vector.load %arg8[%c0_20, %c0_21] : memref<32x32xf32, #tpu.memory_space<vmem>>, vector<32x32xf32>
    %cst_22 = arith.constant dense<0.000000e+00> : vector<16x32xf32>
    %53 = tpu.matmul %51, %52, %cst_22 {dimension_numbers = #tpu.dot_dimension_numbers<[1], [0], [0], [1], [0, 0, 1, 1], [], []>} : vector<16x32xf32>, vector<32x32xf32>, vector<16x32xf32> -> vector<16x32xf32>
    %c0_23 = arith.constant 0 : index
    %c0_24 = arith.constant 0 : index
    %54 = vector.load %arg9[%c0_23, %c0_24] : memref<1x32xf32, #tpu.memory_space<vmem>>, vector<1x32xf32>
    %55 = vector.broadcast %54 : vector<1x32xf32> to vector<16x32xf32>
    %56 = arith.addf %53, %55 : vector<16x32xf32>
    %c0_25 = arith.constant 0 : index
    %c0_26 = arith.constant 0 : index
    %57 = vector.load %arg10[%c0_25, %c0_26] : memref<16x32xf32, #tpu.memory_space<vmem>>, vector<16x32xf32>
    tpu.vector_store %arg10[%c0_25, %c0_26], %56 {strides = array<i32>} : memref<16x32xf32, #tpu.memory_space<vmem>>, vector<16x32xf32>,
    return
  }
  func.func @transform_0(%arg0: i32) -> (i32, i32) {
    %c0_i32 = arith.constant 0 : i32
    %c0_i32_0 = arith.constant 0 : i32
    %c0_i32_1 = arith.constant 0 : i32
    return %c0_i32, %c0_i32_0 : i32, i32
  }
  func.func @transform_1(%arg0: i32) -> (i32, i32) {
    %c0_i32 = arith.constant 0 : i32
    %c0_i32_0 = arith.constant 0 : i32
    %c0_i32_1 = arith.constant 0 : i32
    return %c0_i32, %c0_i32_0 : i32, i32
  }
  func.func @transform_2(%arg0: i32) -> (i32, i32) {
    %c0_i32 = arith.constant 0 : i32
    %c0_i32_0 = arith.constant 0 : i32
    %c0_i32_1 = arith.constant 0 : i32
    return %c0_i32, %c0_i32_0 : i32, i32
  }
  func.func @transform_3(%arg0: i32) -> (i32, i32) {
    %c0_i32 = arith.constant 0 : i32
    %c0_i32_0 = arith.constant 0 : i32
    %c0_i32_1 = arith.constant 0 : i32
    return %c0_i32, %c0_i32_0 : i32, i32
  }
  func.func @transform_4(%arg0: i32) -> (i32, i32) {
    %c0_i32 = arith.constant 0 : i32
    %c0_i32_0 = arith.constant 0 : i32
    %c0_i32_1 = arith.constant 0 : i32
    return %c0_i32, %c0_i32_0 : i32, i32
  }
  func.func @transform_5(%arg0: i32) -> (i32, i32) {
    %c0_i32 = arith.constant 0 : i32
    %c0_i32_0 = arith.constant 0 : i32
    %c0_i32_1 = arith.constant 0 : i32
    return %c0_i32, %c0_i32_0 : i32, i32
  }
  func.func @transform_6(%arg0: i32) -> (i32, i32) {
    %c0_i32 = arith.constant 0 : i32
    %c0_i32_0 = arith.constant 0 : i32
    %c0_i32_1 = arith.constant 0 : i32
    return %c0_i32, %c0_i32_0 : i32, i32
  }
  func.func @transform_7(%arg0: i32) -> (i32, i32) {
    %c0_i32 = arith.constant 0 : i32
    %c0_i32_0 = arith.constant 0 : i32
    %c0_i32_1 = arith.constant 0 : i32
    return %c0_i32, %c0_i32_0 : i32, i32
  }
  func.func @transform_8(%arg0: i32) -> (i32, i32) {
    %c0_i32 = arith.constant 0 : i32
    %c0_i32_0 = arith.constant 0 : i32
    %c0_i32_1 = arith.constant 0 : i32
    return %c0_i32, %c0_i32_0 : i32, i32
  }
  func.func @transform_9(%arg0: i32) -> (i32, i32) {
    %c0_i32 = arith.constant 0 : i32
    %c0_i32_0 = arith.constant 0 : i32
    %c0_i32_1 = arith.constant 0 : i32
    return %c0_i32, %c0_i32_0 : i32, i32
  }
}

</mosaic_0001>

<bundles_post_ra>
// kernel: causal_self_attention.1
= control target key start
LH: loop header
LB: loop body
LE: loop exit
PB: predicated region body
PF: predicated region fallthrough
CT: control target
= control target key end

     0   :  { %s1470_s0 = inlined_call_operand.vmem [shape: f32[16,32], index: 0, kind: input, shape index: {}]   ;;  %s1471_s1 = inlined_call_operand.vmem [shape: f32[32,32], index: 1, kind: input, shape index: {}]   ;;  %s1472_s2 = inlined_call_operand.vmem [shape: f32[32,32], index: 2, kind: input, shape index: {}]   ;;  %s1473_s3 = inlined_call_operand.vmem [shape: f32[32,32], index: 3, kind: input, shape index: {}]   ;;  %s1474_s4 = inlined_call_operand.vmem [shape: f32[1,32], index: 4, kind: input, shape index: {}]   ;;  %s1475_s5 = inlined_call_operand.vmem [shape: f32[1,32], index: 5, kind: input, shape index: {}]   ;;  %s1476_s6 = inlined_call_operand.vmem [shape: f32[1,32], index: 6, kind: input, shape index: {}]   ;;  %s1477_s7 = inlined_call_operand.vmem [shape: f32[32,32], index: 7, kind: input, shape index: {}]   ;;  %s1478_s8 = inlined_call_operand.vmem [shape: f32[1,32], index: 8, kind: input, shape index: {}]   ;;  %s1479_s9 = inlined_call_operand.hbm [shape: f32[16,32], index: 9, kind: output, shape index: {}]  }
   0x1   :  { %v131_v0 = vld [vmem:[%s1472_s2 + $0x18] sm:$0xff]  ;;  %v130_v2 = vld [vmem:[%s1472_s2 + $0x10] sm:$0xff]  ;;  %v129_v4 = vld [vmem:[%s1472_s2 + $0x8] sm:$0xff] }
   0x2   :  { %v38_v1 = vld [vmem:[%s1471_s1 + $0x18] sm:$0xff]  ;;  %1160 = vmatprep.subr.mxu1 %v131_v0  ;;  %v37_v3 = vld [vmem:[%s1471_s1 + $0x10] sm:$0xff]  ;;  %v36_v5 = vld [vmem:[%s1471_s1 + $0x8] sm:$0xff] }
   0x3   :  { %1149 = vmatprep.subr.mxu0 %v38_v1  ;;  %1161 = vmatpush3.msra.mxu1 %v131_v0 }
   0x4   :  { %1150 = vmatpush3.msra.mxu0 %v38_v1  ;;  %1162 = vmatprep.subr.mxu1 %v130_v2 }
   0x5   :  { %1151 = vmatprep.subr.mxu0 %v37_v3 }
   0x6   :  { %14 = vsyncpa [#allocation3], 0  ;;  %1163 = vmatpush3.msra.mxu1 %v130_v2  ;;  %1152 = vmatpush3.msra.mxu0 %v37_v3  ;;  %v128_v6 = vld [vmem:[%s1472_s2] sm:$0xff]  ;;  %vm46_vm0 = vcmask 261120   ;;  %v34_v9 = vld [vmem:[%s1470_s0 + $0x8] sm:$0xff]  ;;  %v1278_v10 = vmov 0.0   ;;  %v617_v29 = vlaneseq }
   0x7   :  { %v33_v7 = vld [vmem:[%s1470_s0] sm:$0xff]  ;;  %1164 = vmatprep.subr.mxu1 %v129_v4  ;;  %1153 = vmatprep.subr.mxu0 %v36_v5  ;;  %vm1279_vm1 = vmmov 0   ;;  %vm320_vm2 = vcmask 130048   ;;  %s1280_s30 = smov 112   ;;  %v217_v21 = vld [vmem:[%s1473_s3 + $0x18] sm:$0xff]  ;;  %v216_v22 = vld [vmem:[%s1473_s3 + $0x10] sm:$0xff] }
   0x8   :  { %v35_v8 = vld [vmem:[%s1471_s1] sm:$0xff]  ;;  %1165 = vmatpush3.msra.mxu1 %v129_v4  ;;  %1154 = vmatpush3.msra.mxu0 %v36_v5  ;;  %v215_v23 = vld [vmem:[%s1473_s3 + $0x8] sm:$0xff]  ;;  %v618_v30 = vshrl.u32 %v617_v29, 7  ;;  %v620_v31 = vand.u32 127, %v617_v29  ;;  %vm628_vm4 = vcmask 64512   ;;  %s1281_s24 = smov 16  }
   0x9   :  { %1166 = vmatprep.subr.mxu1 %v128_v6  ;;  %1168 = vmatprep.mubr.msk.f32.mxu1 %vm46_vm0, %v33_v7  ;;  %v1088_v11 = vld [vmem:[%s1475_s5] ss:$0 sm:$0xff]  ;;  %v976_v29 = vld [vmem:[%s1477_s7 + $0x8] sm:$0xff]  ;;  %s1282_s26 = smov [#allocation2]  }
   0xa   :  { %1167 = vmatpush3.msra.mxu1 %v128_v6  ;;  %1155 = vmatprep.subr.mxu0 %v35_v8  ;;  %v1085_v13 = vld [vmem:[%s1474_s4] ss:$0 sm:$0xff]  ;;  %vm621_vm3 = vcmp.ge.s32.totalorder %v618_v30, %v620_v31  ;;  %s1074_s27 = sshll.u32 %s1282_s26, 4  ;;  %s1075_s27 = int_to_ptr.vmem [resolvable:$true] %s1074_s27 }
   0xb   :  { %1169 = vmatmul.mubr.msk.f32.vlgmr.msra.gmra.mxu1 %vm46_vm0, %v34_v9  ;;  %1156 = vmatpush3.msra.mxu0 %v35_v8  ;;  %v214_v24 = vld [vmem:[%s1473_s3] sm:$0xff]  ;;  %s1256_s28 = scalar_lea.vmem %s1075_s27, 256  ;;  %p1261_p1 = scmp.lt.s32.totalorder %s1075_s27, %s1075_s27 }
   0xc   :  { %1157 = vmatprep.mubr.msk.f32.mxu0 %vm46_vm0, %v33_v7  ;;  %1182 = vmatprep.subr.mxu1 %v1278_v10  ;;  %v1091_v59 = vld [vmem:[%s1476_s6] ss:$0 sm:$0xff]  ;;  %p1257_p0 = scmp.ne.s32.totalorder %s1075_s27, %s1256_s28  ;;  %p1262_p2 = scmp.lt.s32.totalorder %s1256_s28, %s1256_s28 }
   0xd   :  { %1158 = vmatmul.mubr.msk.f32.vlgmr.msra.gmra.mxu0 %vm46_vm0, %v34_v9  ;;  %1184 = vmatprep.mubr.msk.f32.mxu1 %vm1279_vm1, %v1278_v10  ;;  %v975_v30 = vld [vmem:[%s1477_s7] sm:$0xff] }
   0xe   :  { %1179 = vmatprep.mubr.msk.f32.mxu0 %vm46_vm0, %v33_v7  ;;  %1171 = vmatprep.subr.mxu0 %v217_v21  ;;  %p1263_p3 = por %p1262_p2, %p1261_p1 }
   0xf   :  { %1172 = vmatpush3.msra.mxu0 %v217_v21 }
  0x10   :  { %1173 = vmatprep.subr.mxu0 %v216_v22  ;;  %p1264_p4 = pnand %p1263_p3, %p1257_p0 }
  0x11   :  { %1174 = vmatpush3.msra.mxu0 %v216_v22 }
  0x12   :  { %1175 = vmatprep.subr.mxu0 %v215_v23 }
  0x13   :  { %1176 = vmatpush3.msra.mxu0 %v215_v23 }
  0x14   :  { %1177 = vmatprep.subr.mxu0 %v214_v24 }
  0x15   :  { %1178 = vmatpush3.msra.mxu0 %v214_v24  ;;  %v977_v24 = vld [vmem:[%s1477_s7 + $0x10] sm:$0xff] }
  0x16   :  { %1180 = vmatmul.mubr.msk.f32.vlgmr.msra.gmra.mxu0 %vm46_vm0, %v34_v9  ;;  %1202 = vmatprep.subr.mxu0 %v1278_v10 }
  0x17   :  { %1204 = vmatprep.mubr.msk.f32.mxu0 %vm1279_vm1, %v1278_v10 }
  0xcb   :  { %v1170_v12 = vpop.f32.mrf.mxu1 }
  0xcc   :  { %v211_v14 = vadd.f32 %v1170_v12, %v1088_v11 }
  0xcd   :  { %v1159_v15 = vpop.f32.mrf.mxu0  ;;  %v205_v16 = vpop.f32.mrf.mxu1 }
  0xce   :  { %v125_v17 = vadd.f32 %v1159_v15, %v1085_v13  ;;  %v206_v18 = vadd.f32 %v1088_v11, %v205_v16  ;;  %310 = vrot.lane.b32.xlu1 %v211_v14, %s1280_s30 }
  0xcf   :  { %v119_v19 = vpop.f32.mrf.mxu0 }
  0xd0   :  { %v120_v20 = vadd.f32 %v1085_v13, %v119_v19  ;;  %308 = vrot.lane.b32.xlu0 %v206_v18, %s1280_s30  ;;  %1183 = vmatpush3.xpose.msk.msra.mxu1 %vm320_vm2, %v206_v18 }
  0xd1   :  { %1187 = vmatprep.subr.mxu1 %v1278_v10 }
  0xd2   :  { %304 = vrot.lane.b32.xlu1 %v125_v17, %s1280_s30 }
  0xd3   :  { %1185 = vmatmul.mubr.msk.f32.vlgmr.msra.gmra.mxu1 %vm320_vm2, %v120_v20 }
  0xd4   :  { %302 = vrot.lane.b32.xlu0 %v120_v20, %s1280_s30  ;;  %1188 = vmatpush3.xpose.msk.msra.mxu1 %vm320_vm2, %v211_v14 }
  0xd5   :  { %1189 = vmatprep.mubr.msk.f32.mxu1 %vm1279_vm1, %v1278_v10  ;;  %1192 = vmatprep.subr.mxu1 %v1278_v10 }
  0xd6   :  { %v1181_v58 = vpop.f32.mrf.mxu0 }
  0xd7   :  { %1190 = vmatmul.mubr.msk.f32.vlgmr.msra.gmra.mxu1 %vm320_vm2, %v125_v17  ;;  %v297_v60 = vadd.f32 %v1181_v58, %v1091_v59 }
  0xd8   :  { %1194 = vmatprep.mubr.msk.f32.mxu1 %vm1279_vm1, %v1278_v10  ;;  %v291_v61 = vpop.f32.mrf.mxu0 }
  0xd9   :  { %v292_v62 = vadd.f32 %v1091_v59, %v291_v61 }
  0xdb   :  { %1203 = vmatpush3.msra.mxu0 %v292_v62 }
  0xdc   :  { %1212 = vmatprep.subr.mxu0 %v1278_v10 }
 0x140   :  { %v311_v26 = vpop.permute.xlu1 %310 }
 0x142   :  { %v309_v25 = vpop.permute.xlu0 %308 }
 0x143   :  { %1193 = vmatpush3.xpose.msk.msra.mxu1 %vm320_vm2, %v309_v25 }
 0x144   :  { %1197 = vmatprep.subr.mxu1 %v1278_v10  ;;  %v305_v28 = vpop.permute.xlu1 %304 }
 0x146   :  { %v303_v27 = vpop.permute.xlu0 %302 }
 0x147   :  { %1195 = vmatmul.mubr.msk.f32.vlgmr.msra.gmra.mxu1 %vm320_vm2, %v303_v27 }
 0x148   :  { %1198 = vmatpush3.xpose.msk.msra.mxu1 %vm320_vm2, %v311_v26  ;;  %1199 = vmatprep.mubr.msk.f32.mxu1 %vm1279_vm1, %v1278_v10 }
 0x149   :  { %1207 = vmatprep.subr.mxu1 %v1278_v10 }
 0x14b   :  { %1200 = vmatmul.mubr.msk.f32.vlgmr.msra.gmra.mxu1 %vm320_vm2, %v305_v28 }
 0x14c   :  { %1209 = vmatprep.mubr.msk.f32.mxu1 %vm1279_vm1, %v1278_v10  ;;  %1208 = vmatpush3.msra.mxu1 %v297_v60 }
 0x14d   :  { %1217 = vmatprep.subr.mxu1 %v1278_v10 }
 0x193   :  { %v391_v32 = vpop.f32.mrf.mxu1 }
 0x194   :  { %v624_v33 = vsel %vm621_vm3, %v391_v32, -1e+30 }
 0x195   :  { %v1186_v34 = vpop.f32.mrf.mxu1  ;;  %v629_v35 = vsel %vm628_vm4, %v624_v33, -inf }
 0x196   :  { %630 = vmax.xlane.f32.xlu0 %v629_v35 }
 0x197   :  { %v465_v36 = vpop.f32.mrf.mxu1 }
 0x198   :  { %v625_v37 = vsel %vm621_vm3, %v465_v36, -1e+30 }
 0x199   :  { %v1191_v38 = vpop.f32.mrf.mxu1  ;;  %v632_v39 = vsel %vm628_vm4, %v625_v37, -inf }
 0x19a   :  { %633 = vmax.xlane.f32.xlu1 %v632_v39  ;;  %v1106_v39 = vld [vmem:[%s1478_s8] ss:$0 sm:$0xff] }
 0x207   :  { %v539_v40 = vpop.f32.mrf.mxu1 }
 0x208   :  { %v626_v41 = vsel %vm621_vm3, %v539_v40, -1e+30 }
 0x209   :  { %v1196_v42 = vpop.f32.mrf.mxu1  ;;  %v635_v43 = vsel %vm628_vm4, %v626_v41, -inf }
 0x20a   :  { %636 = vmax.xlane.f32.xlu0 %v635_v43 }
 0x20b   :  { %v613_v44 = vpop.f32.mrf.mxu1 }
 0x20c   :  { %v627_v45 = vsel %vm621_vm3, %v613_v44, -1e+30 }
 0x20d   :  { %v1201_v46 = vpop.f32.mrf.mxu1  ;;  %v638_v47 = vsel %vm628_vm4, %v627_v45, -inf }
 0x20e   :  { %639 = vmax.xlane.f32.xlu0 %v638_v47 }
 0x21f   :  { %v631_v48 = vpop.xlane.xlu0 %630 }
 0x220   :  { %v641_v49 = vsub.f32 %v624_v33, %v631_v48 }
 0x222   :  { %v645_v50 = vmul.f32 1.442695, %v641_v49 }
 0x223   :  { %v634_v51 = vpop.xlane.xlu1 %633 }
 0x224   :  { %1240 = vpow2.f32 %v645_v50  ;;  %v642_v52 = vsub.f32 %v625_v37, %v634_v51 }
 0x226   :  { %v647_v53 = vmul.f32 1.442695, %v642_v52 }
 0x228   :  { %1242 = vpow2.f32 %v647_v53 }
 0x231   :  { %v1241_v54 = vpop.eup %1240 }
 0x232   :  { %v653_v55 = vsel %vm628_vm4, %v1241_v54, 0.0 }
 0x233   :  { %654 = vadd.xlane.f32.xlu1 %v653_v55 }
 0x235   :  { %v1243_v56 = vpop.eup %1242 }
 0x236   :  { %v656_v57 = vsel %vm628_vm4, %v1243_v56, 0.0 }
 0x237   :  { %657 = vadd.xlane.f32.xlu0 %v656_v57 }
 0x293   :  { %v637_v63 = vpop.xlane.xlu0 %636 }
 0x294   :  { %v643_v0 = vsub.f32 %v626_v41, %v637_v63 }
 0x296   :  { %v649_v1 = vmul.f32 1.442695, %v643_v0 }
 0x297   :  { %v640_v2 = vpop.xlane.xlu0 %639 }
 0x298   :  { %1244 = vpow2.f32 %v649_v1  ;;  %v644_v3 = vsub.f32 %v627_v45, %v640_v2 }
 0x29a   :  { %v651_v4 = vmul.f32 1.442695, %v644_v3 }
 0x29c   :  { %1246 = vpow2.f32 %v651_v4 }
 0x2a5   :  { %v1245_v5 = vpop.eup %1244 }
 0x2a6   :  { %v659_v6 = vsel %vm628_vm4, %v1245_v5, 0.0 }
 0x2a7   :  { %660 = vadd.xlane.f32.xlu1 %v659_v6 }
 0x2a9   :  { %v1247_v7 = vpop.eup %1246 }
 0x2aa   :  { %v662_v8 = vsel %vm628_vm4, %v1247_v7, 0.0 }
 0x2ab   :  { %663 = vadd.xlane.f32.xlu0 %v662_v8 }
 0x2b8   :  { %314 = vrot.lane.b32.xlu1 %v292_v62, %s1280_s30 }
 0x2bc   :  { %v655_v9 = vpop.xlane.xlu1 %654 }
 0x2bd   :  { %1248 = vrcp.f32 %v655_v9 }
 0x2c0   :  { %v658_v11 = vpop.xlane.xlu0 %657 }
 0x2c1   :  { %1250 = vrcp.f32 %v658_v11  ;;  %316 = vrot.lane.b32.xlu0 %v297_v60, %s1280_s30 }
 0x2ca   :  { %v1249_v12 = vpop.eup %1248 }
 0x2cb   :  { %v669_v13 = vmul.f32 %v1249_v12, %v1241_v54 }
 0x2cd   :  { %1205 = vmatmul.mubr.msk.f32.vlgmr.msra.gmra.mxu0 %vm628_vm4, %v669_v13 }
 0x2ce   :  { %v1251_v14 = vpop.eup %1250  ;;  %1214 = vmatprep.mubr.msk.f32.mxu0 %vm1279_vm1, %v1278_v10 }
 0x2cf   :  { %v670_v15 = vmul.f32 %v1251_v14, %v1243_v56 }
 0x2d1   :  { %1210 = vmatmul.mubr.msk.f32.vlgmr.msra.gmra.mxu1 %vm628_vm4, %v670_v15 }
 0x2d2   :  { %1219 = vmatprep.mubr.msk.f32.mxu1 %vm1279_vm1, %v1278_v10  ;;  %v978_v10 = vld [vmem:[%s1477_s7 + $0x18] sm:$0xff] }
 0x330   :  { %v661_v16 = vpop.xlane.xlu1 %660 }
 0x331   :  { %1252 = vrcp.f32 %v661_v16 }
 0x334   :  { %v664_v17 = vpop.xlane.xlu0 %663  ;;  %v315_v18 = vpop.permute.xlu1 %314 }
 0x335   :  { %1254 = vrcp.f32 %v664_v17  ;;  %1213 = vmatpush3.msra.mxu0 %v315_v18 }
 0x336   :  { %1222 = vmatprep.subr.mxu0 %v978_v10 }
 0x338   :  { %v317_v19 = vpop.permute.xlu0 %316 }
 0x339   :  { %1218 = vmatpush3.msra.mxu1 %v317_v19 }
 0x33e   :  { %v1253_v20 = vpop.eup %1252 }
 0x33f   :  { %v671_v21 = vmul.f32 %v1253_v20, %v1245_v5 }
 0x341   :  { %1215 = vmatmul.mubr.msk.f32.vlgmr.msra.gmra.mxu0 %vm628_vm4, %v671_v21 }
 0x342   :  { %v1255_v22 = vpop.eup %1254  ;;  %1223 = vmatpush3.msra.mxu0 %v978_v10 }
 0x343   :  { %v672_v23 = vmul.f32 %v1255_v22, %v1247_v7  ;;  %1224 = vmatprep.subr.mxu0 %v977_v24 }
 0x344   :  { %1225 = vmatpush3.msra.mxu0 %v977_v24 }
 0x345   :  { %1220 = vmatmul.mubr.msk.f32.vlgmr.msra.gmra.mxu1 %vm628_vm4, %v672_v23  ;;  %1226 = vmatprep.subr.mxu0 %v976_v29 }
 0x346   :  { %1227 = vmatpush3.msra.mxu0 %v976_v29 }
 0x347   :  { %1228 = vmatprep.subr.mxu0 %v975_v30 }
 0x348   :  { %1229 = vmatpush3.msra.mxu0 %v975_v30 }
 0x38d   :  { %v742_v25 = vpop.f32.mrf.mxu0 }
 0x38f   :  { %v1206_v26 = vpop.f32.mrf.mxu0 }
 0x391   :  { %v815_v27 = vpop.f32.mrf.mxu1 }
 0x393   :  { %v1211_v28 = vpop.f32.mrf.mxu1 }
 0x401   :  { %v888_v31 = vpop.f32.mrf.mxu0 }
 0x402   :  { %967 = vrot.lane.b32.xlu1 %v888_v31, %s1281_s24 }
 0x403   :  { %v1216_v32 = vpop.f32.mrf.mxu0 }
 0x405   :  { %v961_v33 = vpop.f32.mrf.mxu1 }
 0x406   :  { %969 = vrot.lane.b32.xlu1 %v961_v33, %s1281_s24 }
 0x407   :  { %v1221_v34 = vpop.f32.mrf.mxu1 }
 0x474   :  { %v968_v35 = vpop.permute.xlu1 %967 }
 0x475   :  { %v973_v36 = vsel %vm320_vm2, %v742_v25, %v968_v35 }
 0x476   :  { %1230 = vmatprep.mubr.msk.f32.mxu0 %vm46_vm0, %v973_v36 }
 0x478   :  { %v970_v37 = vpop.permute.xlu1 %969 }
 0x479   :  { %v974_v38 = vsel %vm320_vm2, %v815_v27, %v970_v37 }
 0x47a   :  { %1231 = vmatmul.mubr.msk.f32.vlgmr.msra.gmra.mxu0 %vm46_vm0, %v974_v38 }
 0x53a   :  { %v1232_v40 = vpop.f32.mrf.mxu0 }
 0x53b   :  { %v1064_v41 = vadd.f32 %v1232_v40, %v1106_v39 }
 0x53c   :  { %v1058_v42 = vpop.f32.mrf.mxu0 }
 0x53d   :  { %1068 = vst.msk [vmem:[#allocation2 + $0x8] sm:$0xff] %vm46_vm0, %v1064_v41  ;;  %v1059_v43 = vadd.f32 %v1106_v39, %v1058_v42 }
 0x53f   :  { %1067 = vst.msk [vmem:[#allocation2] sm:$0xff] %vm46_vm0, %v1059_v43 }
 0x540   :  { %1267 = shalt.err (!%p1264_p4)
}
 0x541   :  { %s1283_s0 = smov 128   ;;  %s1284_s8 = smov 8  }
 0x542   :  { %1080 = dma.vmem_to_hbm [thread:$0]  %s1075_s27, 256, %s1479_s9, [#allocation3], %s1283_s0, %s1283_s0, %s1284_s8  }
 0x543   :  { %1276 = dma.done.wait [#allocation3], 256  }
 0x544   :  { %1277 = vsyncadd [#allocation3], 4294967040 }
 0x545   :  { %1084 = vsyncpa [#allocation3], 1 }

</bundles_post_ra>
